<compile_context>
chip_gen: v6e
topology: v6e:2x2x1
jax: 0.10.0
libtpu: 0.0.40
codegen_flags: <defaults>
</compile_context>

<pallas_src>
import functools

import jax
import jax.numpy as jnp
from jax.experimental import pallas as pl
from jax.experimental.pallas import tpu as pltpu  # noqa: F401  (kept for TPU-specific opts)


LANE = 128


def _round_up(n, m=LANE):
    return ((n + m - 1) // m) * m


# ---------------------------------------------------------------------------
# Single forward step:  y = x @ W^T + b   (the module's forward)
# ---------------------------------------------------------------------------
def _linear_kernel(x_ref, w_ref, b_ref, o_ref):
    x = x_ref[...]                      # (B, N_in)
    w = w_ref[...]                      # (N_out_pad, N_in)  PyTorch layout, rows padded
    b = b_ref[...]                      # (1, N_out_pad)
    # x @ W^T on the MXU without materializing a transpose.
    acc = jax.lax.dot_general(
        x, w,
        dimension_numbers=(((1,), (1,)), ((), ())),
        preferred_element_type=jnp.float32,
    )                                   # (B, N_out_pad) f32, lane-dense
    o_ref[...] = (acc + b).astype(o_ref.dtype)


def prepare_params(weight, bias, *, pad_in=False):
    """Zero-pad nn.Linear params once (outside any jit/solver loop).

    weight: (N_out, N_in), bias: (N_out,)
      -> w_pad: (N_out_pad, N_in[_pad]),  b_pad: (1, N_out_pad)
    """
    n_out, n_in = weight.shape
    n_out_p = _round_up(n_out)
    n_in_p = _round_up(n_in) if pad_in else n_in
    w_pad = jnp.zeros((n_out_p, n_in_p), weight.dtype).at[:n_out, :n_in].set(weight)
    b_pad = jnp.zeros((1, n_out_p), bias.dtype).at[0, :n_out].set(bias)
    return w_pad, b_pad


def ode_function_forward(t, x, w_pad, b_pad, n_out):
    """Pallas equivalent of ODEFunction.forward(t, x), with pre-padded params.

    Note (per review): at (8,32)x(32,32) this is launch/DMA-overhead-bound —
    a plain XLA matmul is at least as fast.  Kept as the faithful Pallas
    translation of the module forward; the fused integrator below is the
    performance-relevant kernel.
    """
    del t  # unused, matches the PyTorch module
    batch = x.shape[0]
    n_out_p = w_pad.shape[0]
    out = pl.pallas_call(
        _linear_kernel,
        out_shape=jax.ShapeDtypeStruct((batch, n_out_p), x.dtype),
    )(x, w_pad, b_pad)
    return out[:, :n_out]


# ---------------------------------------------------------------------------
# Fused integration loop: ALL Euler steps inside ONE kernel invocation.
#   dx/dt = f(x) = x @ W^T + b
#   x_{k+1} = x_k + dt * f(x_k) = x_k @ (I + dt*W^T) + dt*b = x_k @ A + c
# ---------------------------------------------------------------------------
def _euler_fused_kernel(x0_ref, a_ref, c_ref, o_ref, *, num_steps):
    # State lives in an f32 loop carry (one vreg at B=8, N_pad=128); it never
    # round-trips through VMEM/o_ref during the loop.
    x = x0_ref[...].astype(jnp.float32)                     # (B, N_pad)
    a = a_ref[...]                                          # (N_pad, N_pad) f32
    # Hoist the bias broadcast out of the time loop.
    c = pl.broadcast_to(c_ref[...], x.shape)                # (B, N_pad)

    def body(_, xk):
        return jnp.dot(xk, a, preferred_element_type=jnp.float32) + c

    x = jax.lax.fori_loop(0, num_steps, body, x, unroll=True)
    o_ref[...] = x.astype(o_ref.dtype)                      # single final store


def ode_integrate_euler(x0, weight, bias, *, dt, num_steps):
    """Explicit-Euler trajectory fully fused into one gridless pallas_call.

    A = I + dt*W^T and c = dt*b are built once in the wrapper (lane-dense,
    zero-padded to a multiple of 128); the kernel is pure MXU + one VPU add
    per step with the state carried as a value.
    """
    batch, n = x0.shape
    n_pad = _round_up(n)

    w32 = weight.astype(jnp.float32)
    b32 = bias.astype(jnp.float32)
    w_pad = jnp.zeros((n_pad, n_pad), jnp.float32).at[:n, :n].set(w32)
    a = jnp.eye(n_pad, dtype=jnp.float32) + dt * w_pad.T          # (N_pad, N_pad)
    c = dt * jnp.zeros((1, n_pad), jnp.float32).at[0, :n].set(b32)  # (1, N_pad)
    x0_pad = jnp.zeros((batch, n_pad), x0.dtype).at[:, :n].set(x0)

    kernel = functools.partial(_euler_fused_kernel, num_steps=int(num_steps))
    out = pl.pallas_call(
        kernel,
        out_shape=jax.ShapeDtypeStruct((batch, n_pad), x0.dtype),
    )(x0_pad, a, c)
    return out[:, :n]


# ---------------------------------------------------------------------------
# Pure-JAX references
# ---------------------------------------------------------------------------
def _ref_forward(t, x, weight, bias):
    del t
    return x @ weight.T + bias


def _ref_integrate(x0, weight, bias, dt, num_steps):
    def body(_, x):
        return x + dt * (x @ weight.T + bias)
    return jax.lax.fori_loop(0, num_steps, body, x0)


if __name__ == "__main__":
    neuron_number = 32
    batch = 8

    key = jax.random.PRNGKey(0)
    kx, kw, kb = jax.random.split(key, 3)

    # nn.Linear default init: U(-1/sqrt(fan_in), 1/sqrt(fan_in))
    bound = 1.0 / jnp.sqrt(jnp.float32(neuron_number))
    weight = jax.random.uniform(
        kw, (neuron_number, neuron_number), jnp.float32, -bound, bound
    )
    bias = jax.random.uniform(kb, (neuron_number,), jnp.float32, -bound, bound)
    x = jax.random.normal(kx, (batch, neuron_number), jnp.float32)
    t = jnp.float32(0.0)  # ignored by forward, kept for API parity

    # --- single forward step (the module's forward) ---
    w_pad, b_pad = prepare_params(weight, bias)   # pad once, outside any loop
    y = ode_function_forward(t, x, w_pad, b_pad, neuron_number)
    y = jax.block_until_ready(y)
    y_ref = _ref_forward(t, x, weight, bias)
    assert y.shape == (batch, neuron_number)
    assert jnp.allclose(y, y_ref, atol=1e-5, rtol=1e-5), "forward mismatch vs reference"

    # --- fused Euler trajectory: one gridless pallas_call, in-kernel loop ---
    dt, num_steps = 0.05, 16
    z = ode_integrate_euler(x, weight, bias, dt=dt, num_steps=num_steps)
    z = jax.block_until_ready(z)
    z_ref = _ref_integrate(x, weight, bias, dt, num_steps)
    assert z.shape == (batch, neuron_number)
    assert jnp.allclose(z, z_ref, atol=1e-4, rtol=1e-4), "fused integrator mismatch vs reference"

    # --- edge case from review: num_steps == 0 must return x0 ---
    z0 = ode_integrate_euler(x, weight, bias, dt=dt, num_steps=0)
    z0 = jax.block_until_ready(z0)
    assert jnp.allclose(z0, x, atol=1e-6), "num_steps=0 should return x0"

    print("KERNEL_OK")
</pallas_src>

<mosaic_0001>
module attributes {stable_mosaic.version = 11 : i64} {
  func.func @_linear_kernel(%arg0: memref<8x32xf32, #tpu.memory_space<vmem>>, %arg1: memref<128x32xf32, #tpu.memory_space<vmem>>, %arg2: memref<1x128xf32, #tpu.memory_space<vmem>>, %arg3: memref<8x128xf32, #tpu.memory_space<vmem>>) attributes {dimension_semantics = [], scalar_prefetch = 0 : i64, scratch_operands = 0 : i64, tpu.core_type = #tpu.core_type<tc>} {
    %c0 = arith.constant 0 : index
    %c0_0 = arith.constant 0 : index
    %0 = vector.load %arg0[%c0, %c0_0] : memref<8x32xf32, #tpu.memory_space<vmem>>, vector<8x32xf32>
    %c0_1 = arith.constant 0 : index
    %c0_2 = arith.constant 0 : index
    %1 = vector.load %arg1[%c0_1, %c0_2] : memref<128x32xf32, #tpu.memory_space<vmem>>, vector<128x32xf32>
    %c0_3 = arith.constant 0 : index
    %c0_4 = arith.constant 0 : index
    %2 = vector.load %arg2[%c0_3, %c0_4] : memref<1x128xf32, #tpu.memory_space<vmem>>, vector<1x128xf32>
    %cst = arith.constant dense<0.000000e+00> : vector<8x128xf32>
    %3 = tpu.matmul %0, %1, %cst {dimension_numbers = #tpu.dot_dimension_numbers<[1], [1], [0], [0], [0, 0, 1, 0], [], []>} : vector<8x32xf32>, vector<128x32xf32>, vector<8x128xf32> -> vector<8x128xf32>
    %4 = vector.broadcast %2 : vector<1x128xf32> to vector<8x128xf32>
    %5 = arith.addf %3, %4 : vector<8x128xf32>
    %c0_5 = arith.constant 0 : index
    %c0_6 = arith.constant 0 : index
    %6 = vector.load %arg3[%c0_5, %c0_6] : memref<8x128xf32, #tpu.memory_space<vmem>>, vector<8x128xf32>
    tpu.vector_store %arg3[%c0_5, %c0_6], %5 {strides = array<i32>} : memref<8x128xf32, #tpu.memory_space<vmem>>, vector<8x128xf32>,
    return
  }
}

</mosaic_0001>

<bundles_post_ra>
// kernel: tpu_custom_call.1
= control target key start
LH: loop header
LB: loop body
LE: loop exit
PB: predicated region body
PF: predicated region fallthrough
CT: control target
= control target key end

     0   :  { %vm39_vm0 = vcmask 261120   ;;  %v271_v1 = vmov 0.0   ;;  %vm272_vm1 = vmmov 0   ;;  %s368_s0 = inlined_call_operand.vmem [shape: f32[8,32], index: 0, kind: input, shape index: {}]   ;;  %s369_s1 = inlined_call_operand.vmem [shape: f32[128,32], index: 1, kind: input, shape index: {}]   ;;  %s370_s2 = inlined_call_operand.vmem [shape: f32[1,128], index: 2, kind: input, shape index: {}]   ;;  %s371_s3 = inlined_call_operand.hbm [shape: f32[8,128], index: 3, kind: output, shape index: {}]  }
   0x1   :  { %v31_v0 = vld [vmem:[%s369_s1 + $0x78] sm:$0xff]  ;;  %211 = vmatprep.subr.mxu0 %v271_v1  ;;  %243 = vmatprep.mubr.msk.f32.mxu0 %vm272_vm1, %v271_v1  ;;  %v30_v2 = vld [vmem:[%s369_s1 + $0x70] sm:$0xff] }
   0x2   :  { %212 = vmatpush3.xpose.msk.msra.mxu0 %vm39_vm0, %v31_v0 }
   0x3   :  { %213 = vmatprep.subr.mxu0 %v271_v1 }
   0x6   :  { %214 = vmatpush3.xpose.msk.msra.mxu0 %vm39_vm0, %v30_v2 }
   0x7   :  { %8 = vsyncpa [#allocation3], 0  ;;  %215 = vmatprep.subr.mxu0 %v271_v1  ;;  %v29_v3 = vld [vmem:[%s369_s1 + $0x68] sm:$0xff]  ;;  %v28_v4 = vld [vmem:[%s369_s1 + $0x60] sm:$0xff]  ;;  %s273_s21 = smov [#allocation2]  }
   0x8   :  { %v27_v5 = vld [vmem:[%s369_s1 + $0x58] sm:$0xff]  ;;  %v26_v6 = vld [vmem:[%s369_s1 + $0x50] sm:$0xff]  ;;  %v25_v7 = vld [vmem:[%s369_s1 + $0x48] sm:$0xff]  ;;  %s168_s22 = sshll.u32 %s273_s21, 4  ;;  %s169_s22 = int_to_ptr.vmem [resolvable:$true] %s168_s22 }
   0x9   :  { %v24_v8 = vld [vmem:[%s369_s1 + $0x40] sm:$0xff]  ;;  %v23_v9 = vld [vmem:[%s369_s1 + $0x38] sm:$0xff]  ;;  %v22_v10 = vld [vmem:[%s369_s1 + $0x30] sm:$0xff]  ;;  %p254_p1 = scmp.lt.s32.totalorder %s169_s22, %s169_s22 }
   0xa   :  { %216 = vmatpush3.xpose.msk.msra.mxu0 %vm39_vm0, %v29_v3  ;;  %v21_v11 = vld [vmem:[%s369_s1 + $0x28] sm:$0xff]  ;;  %v20_v12 = vld [vmem:[%s369_s1 + $0x20] sm:$0xff]  ;;  %v19_v13 = vld [vmem:[%s369_s1 + $0x18] sm:$0xff] }
   0xb   :  { %217 = vmatprep.subr.mxu0 %v271_v1  ;;  %v18_v14 = vld [vmem:[%s369_s1 + $0x10] sm:$0xff]  ;;  %v17_v15 = vld [vmem:[%s369_s1 + $0x8] sm:$0xff]  ;;  %v16_v16 = vld [vmem:[%s369_s1] sm:$0xff]  ;;  %s249_s1 = scalar_lea.vmem %s169_s22, 128 }
   0xc   :  { %v15_v17 = vld [vmem:[%s368_s0] sm:$0xff]  ;;  %p250_p0 = scmp.ne.s32.totalorder %s169_s22, %s249_s1  ;;  %p255_p2 = scmp.lt.s32.totalorder %s249_s1, %s249_s1 }
   0xd   :  { %v176_v18 = vld [vmem:[%s370_s2] ss:$0 sm:$0xff] }
   0xe   :  { %218 = vmatpush3.xpose.msk.msra.mxu0 %vm39_vm0, %v28_v4  ;;  %p256_p3 = por %p255_p2, %p254_p1 }
   0xf   :  { %219 = vmatprep.subr.mxu0 %v271_v1 }
  0x10   :  { %p257_p4 = pnand %p256_p3, %p250_p0 }
  0x12   :  { %220 = vmatpush3.xpose.msk.msra.mxu0 %vm39_vm0, %v27_v5 }
  0x13   :  { %221 = vmatprep.subr.mxu0 %v271_v1 }
  0x16   :  { %222 = vmatpush3.xpose.msk.msra.mxu0 %vm39_vm0, %v26_v6 }
  0x17   :  { %223 = vmatprep.subr.mxu0 %v271_v1 }
  0x1a   :  { %224 = vmatpush3.xpose.msk.msra.mxu0 %vm39_vm0, %v25_v7 }
  0x1b   :  { %225 = vmatprep.subr.mxu0 %v271_v1 }
  0x1e   :  { %226 = vmatpush3.xpose.msk.msra.mxu0 %vm39_vm0, %v24_v8 }
  0x1f   :  { %227 = vmatprep.subr.mxu0 %v271_v1 }
  0x22   :  { %228 = vmatpush3.xpose.msk.msra.mxu0 %vm39_vm0, %v23_v9 }
  0x23   :  { %229 = vmatprep.subr.mxu0 %v271_v1 }
  0x26   :  { %230 = vmatpush3.xpose.msk.msra.mxu0 %vm39_vm0, %v22_v10 }
  0x27   :  { %231 = vmatprep.subr.mxu0 %v271_v1 }
  0x2a   :  { %232 = vmatpush3.xpose.msk.msra.mxu0 %vm39_vm0, %v21_v11 }
  0x2b   :  { %233 = vmatprep.subr.mxu0 %v271_v1 }
  0x2e   :  { %234 = vmatpush3.xpose.msk.msra.mxu0 %vm39_vm0, %v20_v12 }
  0x2f   :  { %235 = vmatprep.subr.mxu0 %v271_v1 }
  0x32   :  { %236 = vmatpush3.xpose.msk.msra.mxu0 %vm39_vm0, %v19_v13 }
  0x33   :  { %237 = vmatprep.subr.mxu0 %v271_v1 }
  0x36   :  { %238 = vmatpush3.xpose.msk.msra.mxu0 %vm39_vm0, %v18_v14 }
  0x37   :  { %239 = vmatprep.subr.mxu0 %v271_v1 }
  0x3a   :  { %240 = vmatpush3.xpose.msk.msra.mxu0 %vm39_vm0, %v17_v15 }
  0x3b   :  { %241 = vmatprep.subr.mxu0 %v271_v1 }
  0x3e   :  { %242 = vmatpush3.xpose.msk.msra.mxu0 %vm39_vm0, %v16_v16 }
  0x41   :  { %244 = vmatmul.mubr.msk.f32.vlgmr.msra.gmra.mxu0 %vm39_vm0, %v15_v17 }
 0x101   :  { %v157_v19 = vpop.f32.mrf.mxu0 }
 0x102   :  { %v158_v20 = vadd.f32 %v176_v18, %v157_v19 }
 0x103   :  { %v245_v21 = vpop.f32.mrf.mxu0 }
 0x104   :  { %161 = vst [vmem:[#allocation2] sm:$0xff] %v158_v20 }
 0x105   :  { %260 = shalt.err (!%p257_p4)
}
 0x106   :  { %171 = dma.vmem_to_hbm [thread:$0]  %s169_s22, 128, %s371_s3, [#allocation3]  }
 0x107   :  { %269 = dma.done.wait [#allocation3], 128  }
 0x108   :  { %270 = vsyncadd [#allocation3], 4294967168 }
 0x109   :  { %175 = vsyncpa [#allocation3], 1 }

</bundles_post_ra>
